<compile_context>
chip_gen: v7x
topology: tpu7x:2x2x1
jax: 0.10.0
libtpu: 0.0.40
codegen_flags: <defaults>
</compile_context>

<pallas_src>
import jax
import jax.numpy as jnp
import numpy as np
from jax.experimental import pallas as pl
from jax.experimental.pallas import tpu as pltpu


def cam_kernel(gamma_ref, x_ref, o_ref):
    """One grid step: NB batch samples, full (C, H*W) slab each."""
    x = x_ref[...].astype(jnp.float32)               # (NB, C, HW)
    gamma = gamma_ref[0]                              # scalar (SMEM)

    # energy[b, c, d] = <x[b, c, :], x[b, d, :]>
    energy = jnp.einsum(
        'bcx,bdx->bcd', x, x,
        preferred_element_type=jnp.float32,
        precision=jax.lax.Precision.HIGHEST)          # (NB, C, C)

    # energy_new = rowmax(energy) - energy, then softmax over last axis
    # (numerically stable: subtract the row max of e_new before exp).
    e_new = jnp.max(energy, axis=-1, keepdims=True) - energy
    e_new = e_new - jnp.max(e_new, axis=-1, keepdims=True)
    p = jnp.exp(e_new)
    attn = p / jnp.sum(p, axis=-1, keepdims=True)     # (NB, C, C)

    out = jnp.einsum(
        'bcd,bdx->bcx', attn, x,
        preferred_element_type=jnp.float32,
        precision=jax.lax.Precision.HIGHEST)          # (NB, C, HW)

    o_ref[...] = (gamma * out + x).astype(o_ref.dtype)


def _pick_batch_block(n, slab_bytes, budget_bytes=8 << 20, cap=32):
    """Largest divisor NB of n s.t. double-buffered in+out (~4x) fits budget."""
    nb = 1
    for d in range(1, min(n, cap) + 1):
        if n % d == 0 and 4 * d * slab_bytes <= budget_bytes:
            nb = d
    return nb


def cam_module(x, gamma):
    """Pallas CAM_Module forward.  x: (N, C, H, W), gamma: (1,) scalar param."""
    N, C, H, W = x.shape
    assert gamma.shape == (1,), "gamma must be a single scalar parameter"
    HW = H * W

    x_flat = x.reshape(N, C, HW)                      # lane-dense layout
    slab_bytes = C * HW * x.dtype.itemsize
    NB = _pick_batch_block(N, slab_bytes)
    grid = (N // NB,)

    out_flat = pl.pallas_call(
        cam_kernel,
        out_shape=jax.ShapeDtypeStruct((N, C, HW), x.dtype),
        grid=grid,
        in_specs=[
            pl.BlockSpec(memory_space=pltpu.MemorySpace.SMEM),   # gamma scalar
            pl.BlockSpec((NB, C, HW), lambda n: (n, 0, 0)),      # x tile
        ],
        out_specs=pl.BlockSpec((NB, C, HW), lambda n: (n, 0, 0)),
        compiler_params=pltpu.CompilerParams(
            dimension_semantics=("parallel",),   # independent samples -> both TCs on v7x
        ),
    )(gamma, x_flat)

    return out_flat.reshape(N, C, H, W)


def cam_ref(x, gamma):
    """Pure-JAX reference mirroring the PyTorch forward."""
    N, C, H, W = x.shape
    v = x.reshape(N, C, H * W).astype(jnp.float32)
    energy = jnp.einsum('ncx,ndx->ncd', v, v,
                        precision=jax.lax.Precision.HIGHEST)
    e_new = jnp.max(energy, axis=-1, keepdims=True) - energy
    attn = jax.nn.softmax(e_new, axis=-1)
    out = jnp.einsum('ncd,ndx->ncx', attn, v,
                     precision=jax.lax.Precision.HIGHEST)
    out = out.reshape(N, C, H, W)
    return (gamma[0] * out + x.astype(jnp.float32)).astype(x.dtype)


if __name__ == "__main__":
    N, C, H, W = 2, 4, 16, 16
    key = jax.random.PRNGKey(0)
    kx, _ = jax.random.split(key)
    x = jax.random.normal(kx, (N, C, H, W), dtype=jnp.float32)
    # PyTorch initializes gamma to 0 (output == input); use a nonzero value so
    # the attention path is actually exercised by the correctness check.
    gamma = jnp.array([0.75], dtype=jnp.float32)

    out = jax.block_until_ready(cam_module(x, gamma))
    ref = cam_ref(x, gamma)
    np.testing.assert_allclose(np.asarray(out), np.asarray(ref),
                               rtol=1e-3, atol=1e-3)
    print("KERNEL_OK")
</pallas_src>

<mosaic_0001>
module attributes {stable_mosaic.version = 11 : i64} {
  func.func @cam_kernel(%arg0: i32, %arg1: memref<1xf32, #tpu.memory_space<smem>>, %arg2: memref<2x4x256xf32, #tpu.memory_space<vmem>>, %arg3: memref<2x4x256xf32, #tpu.memory_space<vmem>>) attributes {dimension_semantics = [#tpu.dimension_semantics<parallel>], iteration_bounds = array<i64: 1>, scalar_prefetch = 0 : i64, scratch_operands = 0 : i64, tpu.core_type = #tpu.core_type<tc>, window_params = [{transform_indices = @transform_0, window_bounds = array<i64: 1>}, {transform_indices = @transform_1, window_bounds = array<i64: 2, 4, 256>}, {transform_indices = @transform_2, window_bounds = array<i64: 2, 4, 256>}]} {
    %c0 = arith.constant 0 : index
    %c0_0 = arith.constant 0 : index
    %c0_1 = arith.constant 0 : index
    %0 = vector.load %arg2[%c0, %c0_0, %c0_1] : memref<2x4x256xf32, #tpu.memory_space<vmem>>, vector<2x4x256xf32>
    %c0_2 = arith.constant 0 : index
    %1 = memref.load %arg1[%c0_2] : memref<1xf32, #tpu.memory_space<smem>>
    "tpu.trace_start"() <{level = 10 : i32, message = "bcx,bdx->bcd"}> : () -> ()
    %cst = arith.constant dense<0.000000e+00> : vector<2x4x4xf32>
    %2 = tpu.matmul %0, %0, %cst {dimension_numbers = #tpu.dot_dimension_numbers<[2], [2], [1], [1], [0, 0, 0, 1, 1, 1], [0], [0]>, precision = #tpu.contract_precision<fp32>} : vector<2x4x256xf32>, vector<2x4x256xf32>, vector<2x4x4xf32> -> vector<2x4x4xf32>
    "tpu.trace_stop"() : () -> ()
    %cst_3 = arith.constant dense<0xFF800000> : vector<2x4xf32>
    %3 = vector.multi_reduction <maximumf>, %2, %cst_3 [2] : vector<2x4x4xf32> to vector<2x4xf32>
    %4 = vector.shape_cast %3 : vector<2x4xf32> to vector<2x4x1xf32>
    %5 = vector.broadcast %4 : vector<2x4x1xf32> to vector<2x4x4xf32>
    %6 = arith.subf %5, %2 : vector<2x4x4xf32>
    %cst_4 = arith.constant dense<0xFF800000> : vector<2x4xf32>
    %7 = vector.multi_reduction <maximumf>, %6, %cst_4 [2] : vector<2x4x4xf32> to vector<2x4xf32>
    %8 = vector.shape_cast %7 : vector<2x4xf32> to vector<2x4x1xf32>
    %9 = vector.broadcast %8 : vector<2x4x1xf32> to vector<2x4x4xf32>
    %10 = arith.subf %6, %9 : vector<2x4x4xf32>
    %11 = math.exp %10 : vector<2x4x4xf32>
    %cst_5 = arith.constant dense<0.000000e+00> : vector<2x4xf32>
    %12 = vector.multi_reduction <add>, %11, %cst_5 [2] : vector<2x4x4xf32> to vector<2x4xf32>
    %13 = vector.shape_cast %12 : vector<2x4xf32> to vector<2x4x1xf32>
    %14 = vector.broadcast %13 : vector<2x4x1xf32> to vector<2x4x4xf32>
    %15 = arith.divf %11, %14 : vector<2x4x4xf32>
    "tpu.trace_start"() <{level = 10 : i32, message = "bcd,bdx->bcx"}> : () -> ()
    %cst_6 = arith.constant dense<0.000000e+00> : vector<2x4x256xf32>
    %16 = tpu.matmul %15, %0, %cst_6 {dimension_numbers = #tpu.dot_dimension_numbers<[2], [1], [1], [2], [0, 0, 0, 1, 1, 2], [0], [0]>, precision = #tpu.contract_precision<fp32>} : vector<2x4x4xf32>, vector<2x4x256xf32>, vector<2x4x256xf32> -> vector<2x4x256xf32>
    "tpu.trace_stop"() : () -> ()
    %17 = vector.broadcast %1 : f32 to vector<2x4x256xf32>
    %18 = arith.mulf %17, %16 : vector<2x4x256xf32>
    %19 = arith.addf %18, %0 : vector<2x4x256xf32>
    %c0_7 = arith.constant 0 : index
    %c0_8 = arith.constant 0 : index
    %c0_9 = arith.constant 0 : index
    %20 = vector.load %arg3[%c0_7, %c0_8, %c0_9] : memref<2x4x256xf32, #tpu.memory_space<vmem>>, vector<2x4x256xf32>
    tpu.vector_store %arg3[%c0_7, %c0_8, %c0_9], %19 {strides = array<i32>} : memref<2x4x256xf32, #tpu.memory_space<vmem>>, vector<2x4x256xf32>,
    return
  }
  func.func @transform_0(%arg0: i32) -> i32 {
    %c0_i32 = arith.constant 0 : i32
    %c0_i32_0 = arith.constant 0 : i32
    return %c0_i32 : i32
  }
  func.func @transform_1(%arg0: i32) -> (i32, i32, i32) {
    %c0_i32 = arith.constant 0 : i32
    %c0_i32_0 = arith.constant 0 : i32
    %c0_i32_1 = arith.constant 0 : i32
    return %arg0, %c0_i32, %c0_i32_0 : i32, i32, i32
  }
  func.func @transform_2(%arg0: i32) -> (i32, i32, i32) {
    %c0_i32 = arith.constant 0 : i32
    %c0_i32_0 = arith.constant 0 : i32
    %c0_i32_1 = arith.constant 0 : i32
    return %arg0, %c0_i32, %c0_i32_0 : i32, i32, i32
  }
}

</mosaic_0001>

<bundles_post_ra>
// kernel: tpu_custom_call.1
= control target key start
LH: loop header
LB: loop body
LE: loop exit
PB: predicated region body
PF: predicated region fallthrough
CT: control target
= control target key end

     0   :  { %8 = vsyncpa [#allocation4], 0  ;;  %s2242_s0 = inlined_call_operand.<no memory space> [shape: f32[1], index: 0, kind: input, shape index: {}]   ;;  %s2243_s1 = inlined_call_operand.hbm [shape: f32[2,4,256], index: 1, kind: input, shape index: {}]   ;;  %s2244_s2 = inlined_call_operand.hbm [shape: f32[2,4,256], index: 2, kind: output, shape index: {}]  }
   0x1   :  { %9 = vsyncpa [#allocation5], 0  ;;  %s2096_s9 = smov [#allocation3]   ;;  %s2048_s13 = scalar_lea.hbm %s2243_s1, 256 }
   0x2   :  { %s17_s10 = sshll.u32 %s2096_s9, 4  ;;  %p2049_p0 = scmp.ne.s32.totalorder %s2243_s1, %s2048_s13  ;;  %s18_s10 = int_to_ptr.vmem [resolvable:$true] %s17_s10 }
   0x3   :  { %p2052_p1 = scmp.lt.u32.totalorder %s2048_s13, %s2243_s1 }
   0x5   :  { %p2054_p2 = pnand %p2052_p1, %p2049_p0 }
   0x7   :  { %2057 = shalt.err (!%p2054_p2)
}
   0x8   :  { %s2058_s18 = scalar_lea.vmem %s18_s10, 256  ;;  %p2063_p4 = scmp.lt.s32.totalorder %s18_s10, %s18_s10 }
   0x9   :  { %p2059_p3 = scmp.ne.s32.totalorder %s18_s10, %s2058_s18  ;;  %p2064_p5 = scmp.lt.s32.totalorder %s2058_s18, %s2058_s18 }
   0xb   :  { %p2065_p6 = por %p2064_p5, %p2063_p4 }
   0xd   :  { %p2066_p7 = pnand %p2065_p6, %p2059_p3 }
   0xf   :  { %2069 = shalt.err (!%p2066_p7)
}
  0x10   :  { %s2097_s19 = smov 128   ;;  %s2098_s20 = smov 8  }
  0x11   :  { %23 = dma.hbm_to_vmem [thread:$0]  %s2243_s1, 256, %s18_s10, [#allocation4], %s2097_s19, %s2097_s19, %s2098_s20  }
  0x12   :  { %2092 = dma.done.wait [#allocation4], 256  }
  0x13   :  { %2093 = vsyncadd [#allocation4], 4294967040  ;;  %v2131_v0 = vld [vmem:[#allocation3] sm:$0xff]  ;;  %v2133_v1 = vld [vmem:[#allocation3 + $0x8] sm:$0xff]  ;;  %vm980_vm0 = vcmask 27648   ;;  %vm1015_vm1 = vcmask 1043456  }
  0x14   :  { %v2137_v2 = vcombine.high %v2131_v0, %v2131_v0  ;;  %v2140_v3 = vand.u32 4294901760, %v2131_v0  ;;  %v2144_v4 = vcombine.high %v2133_v1, %v2133_v1  ;;  %v2147_v5 = vand.u32 4294901760, %v2133_v1  ;;  %s2100_s24 = smov [#allocation6]  }
  0x15   :  { %v1016_v47 = vsel %vm1015_vm1, %v2131_v0, 0  ;;  %v2099_v48 = vmov 0.0   ;;  %v1488_v54 = vsel %vm1015_vm1, %v2133_v1, 0  ;;  %vm1011_vm2 = vcmask 31744   ;;  %s1981_s25 = sshll.u32 %s2100_s24, 4  ;;  %s1982_s25 = int_to_ptr.vmem [resolvable:$true] %s1981_s25 }
  0x16   :  { %v33_v6 = vand.u32 4294901760, %v2137_v2  ;;  %v508_v7 = vand.u32 4294901760, %v2144_v4  ;;  %v106_v8 = vsub.f32 %v2131_v0, %v2140_v3  ;;  %v581_v9 = vsub.f32 %v2133_v1, %v2147_v5  ;;  %p2075_p9 = scmp.lt.s32.totalorder %s1982_s25, %s1982_s25 }
  0x17   :  { %v1018_v46 = vsel %vm1015_vm1, %v2137_v2, 0  ;;  %v1490_v49 = vsel %vm1015_vm1, %v2144_v4, 0  ;;  %v2182_v51 = vand.u32 4294901760, %v1016_v47  ;;  %v2194_v56 = vand.u32 4294901760, %v1488_v54 }
  0x18   :  { %34 = vmatprep.subr.mxu0 %v33_v6  ;;  %509 = vmatprep.subr.mxu1 %v508_v7  ;;  %v100_v10 = vsub.f32 %v2137_v2, %v33_v6  ;;  %v575_v11 = vsub.f32 %v2144_v4, %v508_v7  ;;  %v107_v12 = vand.u32 4294901760, %v106_v8  ;;  %v582_v13 = vand.u32 4294901760, %v581_v9 }
  0x19   :  { %36 = vmatpush1.xpose.msra.mxu0 %v2140_v3  ;;  %511 = vmatpush1.xpose.msra.mxu1 %v2147_v5  ;;  %v2180_v50 = vand.u32 4294901760, %v1018_v46  ;;  %v2184_v52 = vand.u32 4294901760, %v1490_v49 }
  0x1a   :  { %v101_v14 = vand.u32 4294901760, %v100_v10  ;;  %v576_v15 = vand.u32 4294901760, %v575_v11  ;;  %v108_v16 = vsub.f32 %v106_v8, %v107_v12  ;;  %v583_v17 = vsub.f32 %v581_v9, %v582_v13 }
  0x1b   :  { %v1099_v53 = vsub.f32 %v1018_v46, %v2180_v50  ;;  %v2192_v55 = vsub.f32 %v1490_v49, %v2184_v52 }
  0x1c   :  { %v102_v18 = vsub.f32 %v100_v10, %v101_v14  ;;  %v577_v19 = vsub.f32 %v575_v11, %v576_v15  ;;  %v109_v20 = vand.u32 4294901760, %v108_v16  ;;  %v584_v23 = vand.u32 4294901760, %v583_v17 }
  0x1d   :  { %v1100_v57 = vand.u32 4294901760, %v1099_v53  ;;  %v1572_v58 = vand.u32 4294901760, %v2192_v55 }
  0x1e   :  { %v103_v21 = vand.u32 4294901760, %v102_v18  ;;  %v578_v22 = vand.u32 4294901760, %v577_v19 }
  0x1f   :  { %v1101_v59 = vsub.f32 %v1099_v53, %v1100_v57  ;;  %v1573_v60 = vsub.f32 %v2192_v55, %v1572_v58 }
  0x20   :  { %104 = vmatprep.mubr.f32.mxu0 %v103_v21  ;;  %120 = vmatprep.subr.mxu0 %v103_v21 }
  0x21   :  { %579 = vmatprep.mubr.f32.mxu1 %v578_v22  ;;  %110 = vmatmul.mubr.f32.vlgmr.msra.gmra.mrb[0].mxu0 %v109_v20  ;;  %v1102_v61 = vand.u32 4294901760, %v1101_v59  ;;  %v1574_v62 = vand.u32 4294901760, %v1573_v60 }
  0x22   :  { %126 = vmatpush1.xpose.msra.mxu0 %v109_v20  ;;  %585 = vmatmul.mubr.f32.vlgmr.msra.gmra.mrb[0].mxu1 %v584_v23 }
  0x23   :  { %595 = vmatprep.subr.mxu1 %v578_v22  ;;  %190 = vmatprep.mubr.f32.mxu0 %v33_v6 }
  0x24   :  { %601 = vmatpush1.xpose.msra.mxu1 %v584_v23  ;;  %199 = vmatprep.subr.mxu0 %v100_v10 }
  0x25   :  { %665 = vmatprep.mubr.f32.mxu1 %v508_v7  ;;  %674 = vmatprep.subr.mxu1 %v575_v11 }
  0x29   :  { %192 = vmatmul.mubr.f32.vlgmr.msra.gmra.mrb[0].mxu0 %v2140_v3 }
  0x2a   :  { %202 = vmatpush1.xpose.msra.mxu0 %v106_v8  ;;  %667 = vmatmul.mubr.f32.vlgmr.msra.gmra.mrb[0].mxu1 %v2147_v5 }
  0x2b   :  { %677 = vmatpush1.xpose.msra.mxu1 %v581_v9  ;;  %267 = vmatprep.mubr.f32.mxu0 %v100_v10 }
  0x2c   :  { %276 = vmatprep.subr.mxu0 %v33_v6  ;;  %742 = vmatprep.mubr.f32.mxu1 %v575_v11 }
  0x2d   :  { %751 = vmatprep.subr.mxu1 %v508_v7 }
  0x31   :  { %270 = vmatmul.mubr.f32.vlgmr.msra.gmra.mrb[0].mxu0 %v106_v8 }
  0x32   :  { %278 = vmatpush1.xpose.msra.mxu0 %v2140_v3  ;;  %745 = vmatmul.mubr.f32.vlgmr.msra.gmra.mrb[0].mxu1 %v581_v9  ;;  %v1577_v9 = vsub.f32 %v1488_v54, %v2194_v56 }
  0x33   :  { %753 = vmatpush1.xpose.msra.mxu1 %v2147_v5  ;;  %344 = vmatprep.mubr.f32.mxu0 %v101_v14 }
  0x34   :  { %356 = vmatprep.subr.mxu0 %v101_v14  ;;  %819 = vmatprep.mubr.f32.mxu1 %v576_v15  ;;  %v1578_v17 = vand.u32 4294901760, %v1577_v9 }
  0x35   :  { %831 = vmatprep.subr.mxu1 %v576_v15 }
  0x36   :  { %v1579_v23 = vsub.f32 %v1577_v9, %v1578_v17 }
  0x39   :  { %348 = vmatmul.mubr.f32.vlgmr.msra.gmra.mrb[0].mxu0 %v107_v12 }
  0x3a   :  { %360 = vmatpush1.xpose.msra.mxu0 %v107_v12  ;;  %823 = vmatmul.mubr.f32.vlgmr.msra.gmra.mrb[0].mxu1 %v582_v13 }
  0x3b   :  { %835 = vmatpush1.xpose.msra.mxu1 %v582_v13  ;;  %424 = vmatprep.mubr.f32.mxu0 %v33_v6 }
  0x3c   :  { %432 = vmatprep.subr.mxu0 %v33_v6  ;;  %899 = vmatprep.mubr.f32.mxu1 %v508_v7 }
  0x3d   :  { %907 = vmatprep.subr.mxu1 %v508_v7 }
  0x41   :  { %426 = vmatmul.mubr.f32.vlgmr.msra.gmra.mrb[0].mxu0 %v2140_v3 }
  0x42   :  { %434 = vmatpush1.xpose.msra.mxu0 %v2140_v3  ;;  %901 = vmatmul.mubr.f32.vlgmr.msra.gmra.mrb[0].mxu1 %v2147_v5 }
  0x43   :  { %909 = vmatpush1.xpose.msra.mxu1 %v2147_v5  ;;  %498 = vmatprep.mubr.f32.mxu0 %v33_v6 }
  0x44   :  { %973 = vmatprep.mubr.f32.mxu1 %v508_v7  ;;  %1021 = vmatprep.subr.mxu0 %v2180_v50 }
  0x45   :  { %1493 = vmatprep.subr.mxu1 %v2184_v52 }
  0x49   :  { %500 = vmatmul.mubr.f32.vlgmr.msra.gmra.mrb[0].mxu0 %v2140_v3 }
  0x4a   :  { %975 = vmatmul.mubr.f32.vlgmr.msra.gmra.mrb[0].mxu1 %v2147_v5  ;;  %1086 = vmatprep.mubr.f32.mxu0 %v2099_v48  ;;  %v1105_v5 = vsub.f32 %v1016_v47, %v2182_v51 }
  0x4b   :  { %1558 = vmatprep.mubr.f32.mxu1 %v2099_v48  ;;  %1023 = vmatpush1.msra.mxu0 %v2182_v51 }
  0x4c   :  { %1495 = vmatpush1.msra.mxu1 %v2194_v56  ;;  %1103 = vmatprep.subr.mxu0 %v1102_v61  ;;  %v1106_v10 = vand.u32 4294901760, %v1105_v5 }
  0x4d   :  { %1575 = vmatprep.subr.mxu1 %v1574_v62 }
  0x4e   :  { %v1107_v16 = vsub.f32 %v1105_v5, %v1106_v10 }
  0x50   :  { %v1108_v22 = vand.u32 4294901760, %v1107_v16 }
 0x11c   :  { %v501_v24 = vpop.f32.mrb[0].mxu0 }
 0x11d   :  { %v976_v25 = vpop.f32.mrb[0].mxu1  ;;  %v503_v26 = vpop.f32.mrb[1].mxu0  ;;  %v981_v27 = vsel %vm980_vm0, %v501_v24, -inf }
 0x11e   :  { %v978_v28 = vpop.f32.mrb[1].mxu1  ;;  %982 = vmax.xlane.f32.xlu0 %v981_v27  ;;  %v984_v29 = vsel %vm980_vm0, %v976_v25, -inf  ;;  %v1580_v27 = vand.u32 4294901760, %v1579_v23 }
 0x122   :  { %985 = vmax.xlane.f32.xlu0 %v984_v29  ;;  %v1957_v29 = vstv %s2242_s0  ;;  %s2070_s0 = scalar_lea.vmem %s1982_s25, 256 }
 0x123   :  { %p2071_p8 = scmp.ne.s32.totalorder %s1982_s25, %s2070_s0  ;;  %p2076_p10 = scmp.lt.s32.totalorder %s2070_s0, %s2070_s0 }
 0x125   :  { %p2077_p11 = por %p2076_p10, %p2075_p9 }
 0x127   :  { %p2078_p12 = pnand %p2077_p11, %p2071_p8 }
 0x1ab   :  { %v983_v30 = vpop.xlane.xlu0 %982 }
 0x1ac   :  { %v987_v31 = vsub.f32 %v983_v30, %v501_v24 }
 0x1ae   :  { %v989_v32 = vsel %vm980_vm0, %v987_v31, -inf }
 0x1af   :  { %990 = vmax.xlane.f32.xlu1 %v989_v32  ;;  %v986_v33 = vpop.xlane.xlu0 %985 }
 0x1b0   :  { %v988_v34 = vsub.f32 %v986_v33, %v976_v25 }
 0x1b2   :  { %v992_v35 = vsel %vm980_vm0, %v988_v34, -inf }
 0x1b3   :  { %993 = vmax.xlane.f32.xlu1 %v992_v35 }
 0x23c   :  { %v991_v36 = vpop.xlane.xlu1 %990 }
 0x23d   :  { %v995_v37 = vsub.f32 %v987_v31, %v991_v36 }
 0x23f   :  { %v997_v38 = vmul.f32 1.442695, %v995_v37 }
 0x240   :  { %v994_v39 = vpop.xlane.xlu1 %993 }
 0x241   :  { %2040 = vpow2.f32 %v997_v38  ;;  %v996_v40 = vsub.f32 %v988_v34, %v994_v39 }
 0x243   :  { %v999_v41 = vmul.f32 1.442695, %v996_v40 }
 0x245   :  { %2042 = vpow2.f32 %v999_v41 }
 0x24b   :  { %v2041_v42 = vpop.eup %2040 }
 0x24c   :  { %v1001_v43 = vsel %vm980_vm0, %v2041_v42, 0.0 }
 0x24d   :  { %1002 = vadd.xlane.f32.xlu0 %v1001_v43 }
 0x24f   :  { %v2043_v44 = vpop.eup %2042 }
 0x250   :  { %v1004_v45 = vsel %vm980_vm0, %v2043_v44, 0.0 }
 0x251   :  { %1005 = vadd.xlane.f32.xlu1 %v1004_v45 }
 0x2da   :  { %v1003_v63 = vpop.xlane.xlu0 %1002 }
 0x2db   :  { %2044 = vrcp.f32 %v1003_v63 }
 0x2de   :  { %v1006_v3 = vpop.xlane.xlu1 %1005 }
 0x2df   :  { %2046 = vrcp.f32 %v1006_v3 }
 0x2e5   :  { %v2045_v6 = vpop.eup %2044 }
 0x2e6   :  { %v1008_v7 = vmul.f32 %v2045_v6, %v2041_v42 }
 0x2e8   :  { %v1013_v8 = vsel %vm1011_vm2, %v1008_v7, 0 }
 0x2e9   :  { %v2047_v11 = vpop.eup %2046  ;;  %v1087_v12 = vand.u32 4294901760, %v1013_v8 }
 0x2ea   :  { %v1010_v13 = vmul.f32 %v2047_v11, %v2043_v44 }
 0x2eb   :  { %v1088_v14 = vsub.f32 %v1013_v8, %v1087_v12 }
 0x2ec   :  { %v1486_v15 = vsel %vm1011_vm2, %v1010_v13, 0 }
 0x2ed   :  { %v1559_v18 = vand.u32 4294901760, %v1486_v15  ;;  %v1089_v19 = vand.u32 4294901760, %v1088_v14 }
 0x2ef   :  { %v1090_v20 = vsub.f32 %v1088_v14, %v1089_v19  ;;  %v1560_v21 = vsub.f32 %v1486_v15, %v1559_v18 }
 0x2f1   :  { %v1091_v24 = vand.u32 4294901760, %v1090_v20  ;;  %v1561_v25 = vand.u32 4294901760, %v1560_v21 }
 0x2f3   :  { %1092 = vmatmul.mubr.f32.vlgmr.msra.gmra.mrb[2].mxu0 %v1091_v24  ;;  %v1562_v26 = vsub.f32 %v1560_v21, %v1561_v25 }
 0x2f4   :  { %1109 = vmatpush1.msra.mxu0 %v1108_v22  ;;  %1172 = vmatprep.mubr.f32.mxu0 %v2099_v48 }
 0x2f5   :  { %v1563_v28 = vand.u32 4294901760, %v1562_v26  ;;  %1182 = vmatprep.subr.mxu0 %v1099_v53 }
 0x2f7   :  { %1564 = vmatmul.mubr.f32.vlgmr.msra.gmra.mrb[2].mxu1 %v1563_v28 }
 0x2f8   :  { %1581 = vmatpush1.msra.mxu1 %v1580_v27  ;;  %1644 = vmatprep.mubr.f32.mxu1 %v2099_v48 }
 0x2f9   :  { %1654 = vmatprep.subr.mxu1 %v2192_v55 }
 0x2fb   :  { %1174 = vmatmul.mubr.f32.vlgmr.msra.gmra.mrb[2].mxu0 %v1087_v12 }
 0x2fc   :  { %1185 = vmatpush1.msra.mxu0 %v1105_v5  ;;  %1248 = vmatprep.mubr.f32.mxu0 %v2099_v48 }
 0x2fd   :  { %1258 = vmatprep.subr.mxu0 %v2180_v50 }
 0x2ff   :  { %1646 = vmatmul.mubr.f32.vlgmr.msra.gmra.mrb[2].mxu1 %v1559_v18 }
 0x300   :  { %1657 = vmatpush1.msra.mxu1 %v1577_v9  ;;  %1720 = vmatprep.mubr.f32.mxu1 %v2099_v48 }
 0x301   :  { %1730 = vmatprep.subr.mxu1 %v2184_v52 }
 0x303   :  { %1251 = vmatmul.mubr.f32.vlgmr.msra.gmra.mrb[2].mxu0 %v1088_v14 }
 0x304   :  { %1260 = vmatpush1.msra.mxu0 %v2182_v51  ;;  %1323 = vmatprep.mubr.f32.mxu0 %v2099_v48 }
 0x305   :  { %1336 = vmatprep.subr.mxu0 %v1100_v57 }
 0x307   :  { %1723 = vmatmul.mubr.f32.vlgmr.msra.gmra.mrb[2].mxu1 %v1560_v21 }
 0x308   :  { %1732 = vmatpush1.msra.mxu1 %v2194_v56  ;;  %1795 = vmatprep.mubr.f32.mxu1 %v2099_v48 }
 0x309   :  { %1808 = vmatprep.subr.mxu1 %v1572_v58 }
 0x30b   :  { %1327 = vmatmul.mubr.f32.vlgmr.msra.gmra.mrb[2].mxu0 %v1089_v19 }
 0x30c   :  { %1340 = vmatpush1.msra.mxu0 %v1106_v10  ;;  %1403 = vmatprep.mubr.f32.mxu0 %v2099_v48 }
 0x30d   :  { %1412 = vmatprep.subr.mxu0 %v2180_v50 }
 0x30f   :  { %1799 = vmatmul.mubr.f32.vlgmr.msra.gmra.mrb[2].mxu1 %v1561_v25 }
 0x310   :  { %1812 = vmatpush1.msra.mxu1 %v1578_v17  ;;  %1875 = vmatprep.mubr.f32.mxu1 %v2099_v48 }
 0x311   :  { %1884 = vmatprep.subr.mxu1 %v2184_v52 }
 0x313   :  { %1405 = vmatmul.mubr.f32.vlgmr.msra.gmra.mrb[2].mxu0 %v1087_v12 }
 0x314   :  { %1414 = vmatpush1.msra.mxu0 %v2182_v51  ;;  %1477 = vmatprep.mubr.f32.mxu0 %v2099_v48 }
 0x317   :  { %1877 = vmatmul.mubr.f32.vlgmr.msra.gmra.mrb[2].mxu1 %v1559_v18 }
 0x318   :  { %1886 = vmatpush1.msra.mxu1 %v2194_v56  ;;  %1949 = vmatprep.mubr.f32.mxu1 %v2099_v48 }
 0x31b   :  { %1479 = vmatmul.mubr.f32.vlgmr.msra.gmra.mrb[2].mxu0 %v1087_v12 }
 0x31f   :  { %1951 = vmatmul.mubr.f32.vlgmr.msra.gmra.mrb[2].mxu1 %v1559_v18 }
 0x3ee   :  { %v1480_v30 = vpop.f32.mrb[2].mxu0 }
 0x3ef   :  { %v1958_v31 = vmul.f32 %v1957_v29, %v1480_v30  ;;  %v1482_v32 = vpop.f32.mrb[3].mxu0 }
 0x3f0   :  { %v1959_v33 = vmul.f32 %v1957_v29, %v1482_v32 }
 0x3f1   :  { %v1962_v34 = vadd.f32 %v1958_v31, %v2131_v0 }
 0x3f2   :  { %v1963_v35 = vadd.f32 %v1959_v33, %v2137_v2  ;;  %v1952_v36 = vpop.f32.mrb[2].mxu1 }
 0x3f3   :  { %v1960_v37 = vmul.f32 %v1957_v29, %v1952_v36  ;;  %v1954_v38 = vpop.f32.mrb[3].mxu1 }
 0x3f4   :  { %v1970_v39 = vcombine.low %v1962_v34, %v1963_v35  ;;  %v1961_v40 = vmul.f32 %v1957_v29, %v1954_v38 }
 0x3f5   :  { %v1964_v41 = vadd.f32 %v1960_v37, %v2133_v1 }
 0x3f6   :  { %1974 = vst [vmem:[#allocation6] sm:$0xff] %v1970_v39  ;;  %v1965_v42 = vadd.f32 %v1961_v40, %v2144_v4 }
 0x3f8   :  { %v1971_v43 = vcombine.low %v1964_v41, %v1965_v42 }
 0x3fa   :  { %1975 = vst [vmem:[#allocation6 + $0x8] sm:$0xff] %v1971_v43 }
 0x3fb   :  { %2081 = shalt.err (!%p2078_p12)
}
 0x3fc   :  { %s2082_s28 = scalar_lea.hbm %s2244_s2, 256 }
 0x3fd   :  { %p2083_p13 = scmp.ne.s32.totalorder %s2244_s2, %s2082_s28  ;;  %p2086_p0 = scmp.lt.u32.totalorder %s2082_s28, %s2244_s2 }
 0x3ff   :  { %p2088_p1 = pnand %p2086_p0, %p2083_p13 }
 0x401   :  { %2091 = shalt.err (!%p2088_p1)
}
 0x402   :  { %1987 = dma.vmem_to_hbm [thread:$0]  %s1982_s25, 256, %s2244_s2, [#allocation5], %s2097_s19, %s2097_s19, %s2098_s20  }
 0x403   :  { %2094 = dma.done.wait [#allocation5], 256  }
 0x404   :  { %2095 = vsyncadd [#allocation5], 4294967040 }
 0x405   :  { %1991 = vsyncpa [#allocation4], 1 }
 0x406   :  { %1992 = vsyncpa [#allocation5], 1 }

</bundles_post_ra>
